<compile_context>
chip_gen: v6e
topology: v6e:2x2x1
jax: 0.10.0
libtpu: 0.0.40
codegen_flags: <defaults>
</compile_context>

<pallas_src>
import functools
from typing import NamedTuple

import jax
import jax.numpy as jnp
from jax.experimental import pallas as pl
from jax.experimental.pallas import tpu as pltpu

MIN_VAL = float(jnp.finfo(jnp.float32).min)   # torch.finfo(torch.float).min
LN_EPS = 1e-5                                 # torch.nn.LayerNorm default eps
LANE = 128                                    # vreg lane width
B_GRANULE = 32                                # batch-tile granule (covers i8/bf16/f32 sublane tiling)


def _round_up(x, m):
    return ((x + m - 1) // m) * m


def _num_tensorcores():
    """Best-effort TC-per-chip detection (v7x has 2); safe fallback is 1."""
    try:
        kind = jax.devices()[0].device_kind.lower()
        if "v7" in kind:
            return 2
    except Exception:
        pass
    return 1


def _vmem_budget_bytes():
    """Per-TensorCore VMEM budget with headroom (64 MiB on v7x, 128 MiB on v5e/v6e)."""
    cap = 64 << 20   # conservative fallback = v7x capacity
    try:
        info = pltpu.get_tpu_info()
        cap = int(getattr(info, "vmem_capacity_bytes", cap))
    except Exception:
        pass
    return max(cap - (10 << 20), 24 << 20)


class PreparedParams(NamedTuple):
    w1: jax.Array        # (ip, hp) compute dtype, zero padded
    w2: jax.Array        # (hp, hp)
    w3: jax.Array        # (hp, hp)
    w4: jax.Array        # (hp, op)
    consts_h: jax.Array  # (8, hp) f32 rows: [b1, gamma, beta, b2, b3, 0, 0, 0]
    b4: jax.Array        # (1, op) f32


def prepare_params(params, compute_dtype=jnp.bfloat16):
    """Pad every feature dim to a multiple of 128 and cast matmul operands ONCE (outside the
    per-call path).  Returns (PreparedParams, dims) where dims = (input_dim, hidden_dim, output_dim)."""
    w1, b1, g, beta, w2, b2, w3, b3, w4, b4 = params
    input_dim, hidden_dim = w1.shape
    output_dim = w4.shape[1]

    ip = _round_up(input_dim, LANE)
    hp = _round_up(hidden_dim, LANE)
    op = _round_up(output_dim, LANE)
    cdt = compute_dtype

    def pad_mat(a, rows, cols):
        return jnp.pad(a, ((0, rows - a.shape[0]), (0, cols - a.shape[1]))).astype(cdt)

    def pad_row(v, cols):
        return jnp.pad(v, (0, cols - v.shape[0])).astype(jnp.float32)

    consts_h = jnp.zeros((8, hp), jnp.float32)
    consts_h = consts_h.at[0].set(pad_row(b1, hp))
    consts_h = consts_h.at[1].set(pad_row(g, hp))
    consts_h = consts_h.at[2].set(pad_row(beta, hp))
    consts_h = consts_h.at[3].set(pad_row(b2, hp))
    consts_h = consts_h.at[4].set(pad_row(b3, hp))

    prepared = PreparedParams(
        w1=pad_mat(w1, ip, hp),
        w2=pad_mat(w2, hp, hp),
        w3=pad_mat(w3, hp, hp),
        w4=pad_mat(w4, hp, op),
        consts_h=consts_h,
        b4=pad_row(b4, op).reshape(1, op),
    )
    return prepared, (input_dim, hidden_dim, output_dim)


def _actor_mlp_kernel(*refs, hidden_true, has_mask):
    """Fused MLP forward on one [tile_b, features] batch tile. Weights are VMEM-resident."""
    if has_mask:
        (obs_ref, mask_ref, w1_ref, consts_ref, w2_ref, w3_ref, w4_ref, b4_ref, out_ref) = refs
    else:
        (obs_ref, w1_ref, consts_ref, w2_ref, w3_ref, w4_ref, w4b_ref, out_ref) = refs
        b4_ref = w4b_ref

    cdt = w1_ref.dtype          # MXU operand dtype (bf16 or f32); accumulation is always f32
    hp = w1_ref.shape[1]        # padded hidden size (static)

    # Packed per-hidden constants (static row slices -> zero runtime cost).
    b1 = consts_ref[0:1, :]
    gamma = consts_ref[1:2, :]
    beta = consts_ref[2:3, :]
    b2 = consts_ref[3:4, :]
    b3 = consts_ref[4:5, :]

    x = obs_ref[...]
    if x.dtype != cdt:
        x = x.astype(cdt)

    # Linear(input_dim, hidden_dim)
    h = jnp.dot(x, w1_ref[...], preferred_element_type=jnp.float32) + b1

    # LayerNorm(hidden_dim): two-pass biased statistics in f32 (torch semantics, no cancellation).
    # Padded hidden lanes of h are exactly 0 (w1/b1 zero padded); they must be excluded from the
    # centered sum-of-squares, so mask them when hp != hidden_true.
    inv_h = jnp.float32(1.0 / hidden_true)
    mu = jnp.sum(h, axis=-1, keepdims=True) * inv_h
    centered = h - mu
    if hp != hidden_true:
        lane = jax.lax.broadcasted_iota(jnp.int32, h.shape, 1)
        centered = jnp.where(lane < hidden_true, centered, 0.0)
    var = jnp.sum(centered * centered, axis=-1, keepdims=True) * inv_h
    h = centered * jax.lax.rsqrt(var + LN_EPS)
    # gamma/beta are zero padded -> padded hidden lanes stay exactly 0 after the affine.
    h = jnp.maximum(h * gamma + beta, 0.0)                    # affine + ReLU

    # Linear(hidden, hidden) + ReLU
    h = jnp.dot(h.astype(cdt), w2_ref[...], preferred_element_type=jnp.float32)
    h = jnp.maximum(h + b2, 0.0)

    # Linear(hidden, hidden) + ReLU
    h = jnp.dot(h.astype(cdt), w3_ref[...], preferred_element_type=jnp.float32)
    h = jnp.maximum(h + b3, 0.0)

    # Linear(hidden, output_dim)
    y = jnp.dot(h.astype(cdt), w4_ref[...], preferred_element_type=jnp.float32)
    y = y + b4_ref[...]

    # Action mask: x[~mask] = min_val  (skipped entirely when mask is None)
    if has_mask:
        y = jnp.where(mask_ref[...] != 0, y, MIN_VAL)

    out_ref[...] = y.astype(out_ref.dtype)


@functools.partial(jax.jit, static_argnames=("dims", "tile_b"))
def actor_mlp(obs, mask, prepared: PreparedParams, dims, tile_b=256):
    """obs: [B, input_dim] f32; mask: [B, output_dim] bool or None;
    prepared, dims: output of prepare_params(params)."""
    input_dim, hidden_dim, output_dim = dims
    B = obs.shape[0]
    has_mask = mask is not None

    cdt = prepared.w1.dtype
    wsz = jnp.dtype(cdt).itemsize
    ip, hp = prepared.w1.shape
    op = prepared.w4.shape[1]

    # ---- resident-weight VMEM footprint (single-buffered weights + packed consts) ----
    weight_bytes = (ip * hp + 2 * hp * hp + hp * op) * wsz + (8 * hp + 8 * op) * 4
    vmem_budget = _vmem_budget_bytes()

    # ---- batch tiling ----
    multi_tc = _num_tensorcores() >= 2
    b_pad_min = _round_up(B, B_GRANULE)
    tb = min(_round_up(tile_b, B_GRANULE), b_pad_min)
    # On multi-TC parts (v7x) force an even >=2-step split so both cores get work;
    # on 1-TC chips (v5e/v6e) a single full-batch tile avoids per-step grid overhead.
    if multi_tc and b_pad_min // tb < 2 and B >= 2 * B_GRANULE:
        tb = _round_up(pl.cdiv(B, 2), B_GRANULE)

    def footprint(tb_, in_depth):
        io = in_depth * tb_ * (ip * wsz + (op if has_mask else 0)) + 2 * tb_ * op * 4
        act = 4 * tb_ * hp * 4          # live f32 activation working set (generous)
        return weight_bytes + io + act

    # Footprint guard: shrink the batch tile until the resident design fits the per-TC budget.
    while footprint(tb, 2) > vmem_budget and tb > B_GRANULE:
        tb = max(B_GRANULE, _round_up(tb // 2, B_GRANULE))
    if footprint(tb, 2) > vmem_budget:
        # TODO(synk): weight-tiled fallback (grid over hidden blocks + VMEM accumulator).
        raise ValueError("ActorMLP weights do not fit per-TC VMEM; use bf16 weights or a "
                         "weight-tiled variant.")

    B_pad = _round_up(B, tb)
    grid_steps = B_pad // tb
    in_depth = 3 if grid_steps >= 4 else 2   # deeper obs/mask pipeline only when many steps

    obs_p = jnp.pad(obs, ((0, B_pad - B), (0, ip - input_dim))).astype(cdt)

    if in_depth == 2:
        batch_in_spec = lambda shape: pl.BlockSpec(shape, lambda i: (i, 0))
    else:
        batch_in_spec = lambda shape: pl.BlockSpec(shape, lambda i: (i, 0),
                                                   pipeline_mode=pl.Buffered(in_depth))
    out_spec = pl.BlockSpec((tb, op), lambda i: (i, 0))
    # Constant blocks (weights/packed consts): resident across the grid, single-buffered.
    const_spec = lambda shape: pl.BlockSpec(shape, lambda i: (0, 0),
                                            pipeline_mode=pl.Buffered(1))

    in_specs = [batch_in_spec((tb, ip))]
    args = [obs_p]
    if has_mask:
        mask_p = jnp.pad(mask.astype(jnp.int8), ((0, B_pad - B), (0, op - output_dim)))
        in_specs.append(batch_in_spec((tb, op)))
        args.append(mask_p)
    in_specs += [
        const_spec((ip, hp)), const_spec((8, hp)),
        const_spec((hp, hp)), const_spec((hp, hp)),
        const_spec((hp, op)), const_spec((1, op)),
    ]
    args += [prepared.w1, prepared.consts_h, prepared.w2, prepared.w3, prepared.w4, prepared.b4]

    vmem_limit = int(min(max(footprint(tb, in_depth) + (4 << 20), 16 << 20), vmem_budget))

    flops = 2 * B_pad * (ip * hp + 2 * hp * hp + hp * op)
    bytes_accessed = (weight_bytes
                      + B_pad * ip * wsz
                      + B_pad * op * 4
                      + (B_pad * op if has_mask else 0))
    cost = pl.CostEstimate(flops=flops, transcendentals=B_pad, bytes_accessed=bytes_accessed)

    kernel = functools.partial(_actor_mlp_kernel, hidden_true=hidden_dim, has_mask=has_mask)

    out = pl.pallas_call(
        kernel,
        out_shape=jax.ShapeDtypeStruct((B_pad, op), jnp.float32),
        grid_spec=pltpu.PrefetchScalarGridSpec(
            num_scalar_prefetch=0,
            grid=(grid_steps,),
            in_specs=in_specs,
            out_specs=out_spec,
        ),
        compiler_params=pltpu.CompilerParams(
            dimension_semantics=("parallel",),
            vmem_limit_bytes=vmem_limit),
        cost_estimate=cost,
    )(*args)

    return out[:B, :output_dim]


def init_params(key, input_dim, hidden_dim, output_dim):
    ks = jax.random.split(key, 8)
    scale = 0.1
    w1 = scale * jax.random.normal(ks[0], (input_dim, hidden_dim), jnp.float32)
    b1 = scale * jax.random.normal(ks[1], (hidden_dim,), jnp.float32)
    g = jnp.ones((hidden_dim,), jnp.float32)      # LayerNorm weight init
    beta = jnp.zeros((hidden_dim,), jnp.float32)  # LayerNorm bias init
    w2 = scale * jax.random.normal(ks[2], (hidden_dim, hidden_dim), jnp.float32)
    b2 = scale * jax.random.normal(ks[3], (hidden_dim,), jnp.float32)
    w3 = scale * jax.random.normal(ks[4], (hidden_dim, hidden_dim), jnp.float32)
    b3 = scale * jax.random.normal(ks[5], (hidden_dim,), jnp.float32)
    w4 = scale * jax.random.normal(ks[6], (hidden_dim, output_dim), jnp.float32)
    b4 = scale * jax.random.normal(ks[7], (output_dim,), jnp.float32)
    return (w1, b1, g, beta, w2, b2, w3, b3, w4, b4)


def reference_forward(obs, mask, params):
    """Pure-JAX reference mirroring the PyTorch forward."""
    w1, b1, g, beta, w2, b2, w3, b3, w4, b4 = params
    h = obs @ w1 + b1
    mu = h.mean(-1, keepdims=True)
    var = ((h - mu) ** 2).mean(-1, keepdims=True)
    h = (h - mu) / jnp.sqrt(var + LN_EPS) * g + beta
    h = jnp.maximum(h, 0.0)
    h = jnp.maximum(h @ w2 + b2, 0.0)
    h = jnp.maximum(h @ w3 + b3, 0.0)
    y = h @ w4 + b4
    if mask is not None:
        y = jnp.where(mask, y, MIN_VAL)
    return y


if __name__ == "__main__":
    key = jax.random.PRNGKey(0)
    k_obs, k_mask, k_par = jax.random.split(key, 3)

    batch, input_dim, hidden_dim, output_dim = 8, 16, 32, 8

    obs = jax.random.normal(k_obs, (batch, input_dim), jnp.float32)
    mask = jax.random.bernoulli(k_mask, 0.7, (batch, output_dim))
    params = init_params(k_par, input_dim, hidden_dim, output_dim)

    ref = reference_forward(obs, mask, params)

    # f32-operand path: numerically matches the PyTorch module.
    prep_f32, dims = prepare_params(params, compute_dtype=jnp.float32)
    out = jax.block_until_ready(actor_mlp(obs, mask, prep_f32, dims))
    assert out.shape == (batch, output_dim)
    assert jnp.allclose(out, ref, atol=2e-4, rtol=2e-4), "f32 kernel mismatch vs reference"

    # mask=None path (mask DMA / select skipped inside the kernel).
    out_nm = jax.block_until_ready(actor_mlp(obs, None, prep_f32, dims))
    ref_nm = reference_forward(obs, None, params)
    assert jnp.allclose(out_nm, ref_nm, atol=2e-4, rtol=2e-4), "mask=None kernel mismatch"

    # Default bf16-operand path (MXU-native on v5e/v6e/v7x); f32 accumulation, looser tolerance.
    prep_bf16, _ = prepare_params(params)   # default compute_dtype=bfloat16
    out_bf = jax.block_until_ready(actor_mlp(obs, mask, prep_bf16, dims))
    assert jnp.allclose(out_bf, ref, atol=1e-1, rtol=1e-1), "bf16 kernel drifted too far"

    print("KERNEL_OK")
</pallas_src>

<mosaic_0001>
module attributes {stable_mosaic.version = 11 : i64} {
  func.func @_actor_mlp_kernel(%arg0: i32, %arg1: memref<32x128xf32, #tpu.memory_space<vmem>>, %arg2: memref<32x128xi8, #tpu.memory_space<vmem>>, %arg3: memref<128x128xf32, #tpu.memory_space<vmem>>, %arg4: memref<8x128xf32, #tpu.memory_space<vmem>>, %arg5: memref<128x128xf32, #tpu.memory_space<vmem>>, %arg6: memref<128x128xf32, #tpu.memory_space<vmem>>, %arg7: memref<128x128xf32, #tpu.memory_space<vmem>>, %arg8: memref<1x128xf32, #tpu.memory_space<vmem>>, %arg9: memref<32x128xf32, #tpu.memory_space<vmem>>) attributes {dimension_semantics = [#tpu.dimension_semantics<parallel>], iteration_bounds = array<i64: 1>, scalar_prefetch = 0 : i64, scratch_operands = 0 : i64, tpu.core_type = #tpu.core_type<tc>, window_params = [{transform_indices = @transform_0, window_bounds = array<i64: 32, 128>}, {transform_indices = @transform_1, window_bounds = array<i64: 32, 128>}, {pipeline_mode = #tpu.pipeline_mode<synchronous>, transform_indices = @transform_2, window_bounds = array<i64: 128, 128>}, {pipeline_mode = #tpu.pipeline_mode<synchronous>, transform_indices = @transform_3, window_bounds = array<i64: 8, 128>}, {pipeline_mode = #tpu.pipeline_mode<synchronous>, transform_indices = @transform_4, window_bounds = array<i64: 128, 128>}, {pipeline_mode = #tpu.pipeline_mode<synchronous>, transform_indices = @transform_5, window_bounds = array<i64: 128, 128>}, {pipeline_mode = #tpu.pipeline_mode<synchronous>, transform_indices = @transform_6, window_bounds = array<i64: 128, 128>}, {pipeline_mode = #tpu.pipeline_mode<synchronous>, transform_indices = @transform_7, window_bounds = array<i64: 1, 128>}, {transform_indices = @transform_8, window_bounds = array<i64: 32, 128>}]} {
    %c0 = arith.constant 0 : index
    %c0_0 = arith.constant 0 : index
    %0 = vector.load %arg4[%c0, %c0_0] : memref<8x128xf32, #tpu.memory_space<vmem>>, vector<1x128xf32>
    %c1 = arith.constant 1 : index
    %c0_1 = arith.constant 0 : index
    %1 = vector.load %arg4[%c1, %c0_1] : memref<8x128xf32, #tpu.memory_space<vmem>>, vector<1x128xf32>
    %c2 = arith.constant 2 : index
    %c0_2 = arith.constant 0 : index
    %2 = vector.load %arg4[%c2, %c0_2] : memref<8x128xf32, #tpu.memory_space<vmem>>, vector<1x128xf32>
    %c3 = arith.constant 3 : index
    %c0_3 = arith.constant 0 : index
    %3 = vector.load %arg4[%c3, %c0_3] : memref<8x128xf32, #tpu.memory_space<vmem>>, vector<1x128xf32>
    %c4 = arith.constant 4 : index
    %c0_4 = arith.constant 0 : index
    %4 = vector.load %arg4[%c4, %c0_4] : memref<8x128xf32, #tpu.memory_space<vmem>>, vector<1x128xf32>
    %c0_5 = arith.constant 0 : index
    %c0_6 = arith.constant 0 : index
    %5 = vector.load %arg1[%c0_5, %c0_6] : memref<32x128xf32, #tpu.memory_space<vmem>>, vector<32x128xf32>
    %c0_7 = arith.constant 0 : index
    %c0_8 = arith.constant 0 : index
    %6 = vector.load %arg3[%c0_7, %c0_8] : memref<128x128xf32, #tpu.memory_space<vmem>>, vector<128x128xf32>
    %cst = arith.constant dense<0.000000e+00> : vector<32x128xf32>
    %7 = tpu.matmul %5, %6, %cst {dimension_numbers = #tpu.dot_dimension_numbers<[1], [0], [0], [1], [0, 0, 1, 1], [], []>} : vector<32x128xf32>, vector<128x128xf32>, vector<32x128xf32> -> vector<32x128xf32>
    %8 = vector.broadcast %0 : vector<1x128xf32> to vector<32x128xf32>
    %9 = arith.addf %7, %8 : vector<32x128xf32>
    %cst_9 = arith.constant dense<0.000000e+00> : vector<32xf32>
    %10 = vector.multi_reduction <add>, %9, %cst_9 [1] : vector<32x128xf32> to vector<32xf32>
    %11 = vector.shape_cast %10 : vector<32xf32> to vector<32x1xf32>
    %cst_10 = arith.constant 3.125000e-02 : f32
    %12 = vector.broadcast %cst_10 : f32 to vector<32x1xf32>
    %13 = arith.mulf %11, %12 : vector<32x1xf32>
    %14 = vector.broadcast %13 : vector<32x1xf32> to vector<32x128xf32>
    %15 = arith.subf %9, %14 : vector<32x128xf32>
    %16 = tpu.iota {dimensions = array<i32: 1>} : vector<32x128xi32>
    %c32_i32 = arith.constant 32 : i32
    %17 = vector.broadcast %c32_i32 : i32 to vector<32x128xi32>
    %18 = arith.cmpi slt, %16, %17 : vector<32x128xi32>
    %cst_11 = arith.constant 0.000000e+00 : f32
    %19 = vector.broadcast %cst_11 : f32 to vector<32x128xf32>
    %20 = arith.select %18, %15, %19 : vector<32x128xi1>, vector<32x128xf32>
    %21 = arith.mulf %20, %20 : vector<32x128xf32>
    %cst_12 = arith.constant dense<0.000000e+00> : vector<32xf32>
    %22 = vector.multi_reduction <add>, %21, %cst_12 [1] : vector<32x128xf32> to vector<32xf32>
    %23 = vector.shape_cast %22 : vector<32xf32> to vector<32x1xf32>
    %cst_13 = arith.constant 3.125000e-02 : f32
    %24 = vector.broadcast %cst_13 : f32 to vector<32x1xf32>
    %25 = arith.mulf %23, %24 : vector<32x1xf32>
    %cst_14 = arith.constant 9.99999974E-6 : f32
    %26 = vector.broadcast %cst_14 : f32 to vector<32x1xf32>
    %27 = arith.addf %25, %26 : vector<32x1xf32>
    %28 = math.rsqrt %27 : vector<32x1xf32>
    %29 = vector.broadcast %28 : vector<32x1xf32> to vector<32x128xf32>
    %30 = arith.mulf %20, %29 : vector<32x128xf32>
    %31 = vector.broadcast %1 : vector<1x128xf32> to vector<32x128xf32>
    %32 = arith.mulf %30, %31 : vector<32x128xf32>
    %33 = vector.broadcast %2 : vector<1x128xf32> to vector<32x128xf32>
    %34 = arith.addf %32, %33 : vector<32x128xf32>
    %cst_15 = arith.constant 0.000000e+00 : f32
    %35 = vector.broadcast %cst_15 : f32 to vector<32x128xf32>
    %36 = arith.maximumf %34, %35 : vector<32x128xf32>
    %c0_16 = arith.constant 0 : index
    %c0_17 = arith.constant 0 : index
    %37 = vector.load %arg5[%c0_16, %c0_17] : memref<128x128xf32, #tpu.memory_space<vmem>>, vector<128x128xf32>
    %cst_18 = arith.constant dense<0.000000e+00> : vector<32x128xf32>
    %38 = tpu.matmul %36, %37, %cst_18 {dimension_numbers = #tpu.dot_dimension_numbers<[1], [0], [0], [1], [0, 0, 1, 1], [], []>} : vector<32x128xf32>, vector<128x128xf32>, vector<32x128xf32> -> vector<32x128xf32>
    %39 = vector.broadcast %3 : vector<1x128xf32> to vector<32x128xf32>
    %40 = arith.addf %38, %39 : vector<32x128xf32>
    %cst_19 = arith.constant 0.000000e+00 : f32
    %41 = vector.broadcast %cst_19 : f32 to vector<32x128xf32>
    %42 = arith.maximumf %40, %41 : vector<32x128xf32>
    %c0_20 = arith.constant 0 : index
    %c0_21 = arith.constant 0 : index
    %43 = vector.load %arg6[%c0_20, %c0_21] : memref<128x128xf32, #tpu.memory_space<vmem>>, vector<128x128xf32>
    %cst_22 = arith.constant dense<0.000000e+00> : vector<32x128xf32>
    %44 = tpu.matmul %42, %43, %cst_22 {dimension_numbers = #tpu.dot_dimension_numbers<[1], [0], [0], [1], [0, 0, 1, 1], [], []>} : vector<32x128xf32>, vector<128x128xf32>, vector<32x128xf32> -> vector<32x128xf32>
    %45 = vector.broadcast %4 : vector<1x128xf32> to vector<32x128xf32>
    %46 = arith.addf %44, %45 : vector<32x128xf32>
    %cst_23 = arith.constant 0.000000e+00 : f32
    %47 = vector.broadcast %cst_23 : f32 to vector<32x128xf32>
    %48 = arith.maximumf %46, %47 : vector<32x128xf32>
    %c0_24 = arith.constant 0 : index
    %c0_25 = arith.constant 0 : index
    %49 = vector.load %arg7[%c0_24, %c0_25] : memref<128x128xf32, #tpu.memory_space<vmem>>, vector<128x128xf32>
    %cst_26 = arith.constant dense<0.000000e+00> : vector<32x128xf32>
    %50 = tpu.matmul %48, %49, %cst_26 {dimension_numbers = #tpu.dot_dimension_numbers<[1], [0], [0], [1], [0, 0, 1, 1], [], []>} : vector<32x128xf32>, vector<128x128xf32>, vector<32x128xf32> -> vector<32x128xf32>
    %c0_27 = arith.constant 0 : index
    %c0_28 = arith.constant 0 : index
    %51 = vector.load %arg8[%c0_27, %c0_28] : memref<1x128xf32, #tpu.memory_space<vmem>>, vector<1x128xf32>
    %52 = vector.broadcast %51 : vector<1x128xf32> to vector<32x128xf32>
    %53 = arith.addf %50, %52 : vector<32x128xf32>
    %c0_29 = arith.constant 0 : index
    %c0_30 = arith.constant 0 : index
    %54 = vector.load %arg2[%c0_29, %c0_30] : memref<32x128xi8, #tpu.memory_space<vmem>>, vector<32x128xi8>
    %c0_i8 = arith.constant 0 : i8
    %55 = vector.broadcast %c0_i8 : i8 to vector<32x128xi8>
    %56 = arith.cmpi ne, %54, %55 : vector<32x128xi8>
    %cst_31 = arith.constant -3.40282347E+38 : f32
    %57 = vector.broadcast %cst_31 : f32 to vector<32x128xf32>
    %58 = arith.select %56, %53, %57 : vector<32x128xi1>, vector<32x128xf32>
    %c0_32 = arith.constant 0 : index
    %c0_33 = arith.constant 0 : index
    %59 = vector.load %arg9[%c0_32, %c0_33] : memref<32x128xf32, #tpu.memory_space<vmem>>, vector<32x128xf32>
    tpu.vector_store %arg9[%c0_32, %c0_33], %58 {strides = array<i32>} : memref<32x128xf32, #tpu.memory_space<vmem>>, vector<32x128xf32>,
    return
  }
  func.func @transform_0(%arg0: i32) -> (i32, i32) {
    %c0_i32 = arith.constant 0 : i32
    %c0_i32_0 = arith.constant 0 : i32
    return %arg0, %c0_i32 : i32, i32
  }
  func.func @transform_1(%arg0: i32) -> (i32, i32) {
    %c0_i32 = arith.constant 0 : i32
    %c0_i32_0 = arith.constant 0 : i32
    return %arg0, %c0_i32 : i32, i32
  }
  func.func @transform_2(%arg0: i32) -> (i32, i32) {
    %c0_i32 = arith.constant 0 : i32
    %c0_i32_0 = arith.constant 0 : i32
    %c0_i32_1 = arith.constant 0 : i32
    return %c0_i32, %c0_i32_0 : i32, i32
  }
  func.func @transform_3(%arg0: i32) -> (i32, i32) {
    %c0_i32 = arith.constant 0 : i32
    %c0_i32_0 = arith.constant 0 : i32
    %c0_i32_1 = arith.constant 0 : i32
    return %c0_i32, %c0_i32_0 : i32, i32
  }
  func.func @transform_4(%arg0: i32) -> (i32, i32) {
    %c0_i32 = arith.constant 0 : i32
    %c0_i32_0 = arith.constant 0 : i32
    %c0_i32_1 = arith.constant 0 : i32
    return %c0_i32, %c0_i32_0 : i32, i32
  }
  func.func @transform_5(%arg0: i32) -> (i32, i32) {
    %c0_i32 = arith.constant 0 : i32
    %c0_i32_0 = arith.constant 0 : i32
    %c0_i32_1 = arith.constant 0 : i32
    return %c0_i32, %c0_i32_0 : i32, i32
  }
  func.func @transform_6(%arg0: i32) -> (i32, i32) {
    %c0_i32 = arith.constant 0 : i32
    %c0_i32_0 = arith.constant 0 : i32
    %c0_i32_1 = arith.constant 0 : i32
    return %c0_i32, %c0_i32_0 : i32, i32
  }
  func.func @transform_7(%arg0: i32) -> (i32, i32) {
    %c0_i32 = arith.constant 0 : i32
    %c0_i32_0 = arith.constant 0 : i32
    %c0_i32_1 = arith.constant 0 : i32
    return %c0_i32, %c0_i32_0 : i32, i32
  }
  func.func @transform_8(%arg0: i32) -> (i32, i32) {
    %c0_i32 = arith.constant 0 : i32
    %c0_i32_0 = arith.constant 0 : i32
    return %arg0, %c0_i32 : i32, i32
  }
}

</mosaic_0001>

<bundles_post_ra>
// kernel: actor_mlp.1
= control target key start
LH: loop header
LB: loop body
LE: loop exit
PB: predicated region body
PF: predicated region fallthrough
CT: control target
= control target key end

     0   :  { %13 = vsyncpa [#allocation3], 0  ;;  %s1127_s0 = inlined_call_operand.vmem [shape: f32[32,128], index: 0, kind: input, shape index: {}]   ;;  %s1128_s1 = inlined_call_operand.vmem [shape: s8[32,128], index: 1, kind: input, shape index: {}]   ;;  %s1129_s2 = inlined_call_operand.hbm [shape: f32[128,128], index: 2, kind: input, shape index: {}]   ;;  %s1130_s3 = inlined_call_operand.vmem [shape: f32[8,128], index: 3, kind: input, shape index: {}]   ;;  %s1131_s4 = inlined_call_operand.hbm [shape: f32[128,128], index: 4, kind: input, shape index: {}]   ;;  %s1132_s5 = inlined_call_operand.hbm [shape: f32[128,128], index: 5, kind: input, shape index: {}]   ;;  %s1133_s6 = inlined_call_operand.hbm [shape: f32[128,128], index: 6, kind: input, shape index: {}]   ;;  %s1134_s7 = inlined_call_operand.vmem [shape: f32[1,128], index: 7, kind: input, shape index: {}]   ;;  %s1135_s8 = inlined_call_operand.vmem [shape: f32[32,128], index: 8, kind: output, shape index: {}]  }
   0x1   :  { %14 = vsyncpa [#allocation5], 0 }
   0x2   :  { %15 = vsyncpa [#allocation8], 0  ;;  %s982_s27 = smov [#allocation4]   ;;  %s983_s29 = smov [#allocation2]  }
   0x3   :  { %s39_s28 = sshll.u32 %s982_s27, 4  ;;  %s25_s30 = sshll.u32 %s983_s29, 4  ;;  %s40_s28 = int_to_ptr.vmem [resolvable:$true] %s39_s28  ;;  %s26_s30 = int_to_ptr.vmem [resolvable:$true] %s25_s30 }
   0x4   :  { %s904_s9 = scalar_lea.vmem %s40_s28, 2048  ;;  %p909_p1 = scmp.lt.s32.totalorder %s40_s28, %s40_s28 }
   0x5   :  { %p905_p0 = scmp.ne.s32.totalorder %s40_s28, %s904_s9  ;;  %p910_p2 = scmp.lt.s32.totalorder %s904_s9, %s904_s9 }
   0x7   :  { %p911_p3 = por %p910_p2, %p909_p1 }
   0x9   :  { %p912_p4 = pnand %p911_p3, %p905_p0 }
   0xb   :  { %915 = shalt.err (!%p912_p4)
}
   0xc   :  { %s984_s10 = smov 128   ;;  %s985_s11 = smov 8  }
   0xd   :  { %45 = dma.hbm_to_vmem [thread:$0]  %s1131_s4, 2048, %s40_s28, [#allocation5], %s984_s10, %s984_s10, %s985_s11  }
   0xe   :  { %s924_s14 = scalar_lea.vmem %s26_s30, 2048  ;;  %p929_p6 = scmp.lt.s32.totalorder %s26_s30, %s26_s30 }
   0xf   :  { %p925_p5 = scmp.ne.s32.totalorder %s26_s30, %s924_s14  ;;  %p930_p7 = scmp.lt.s32.totalorder %s924_s14, %s924_s14 }
  0x11   :  { %p931_p8 = por %p930_p7, %p929_p6 }
  0x13   :  { %p932_p9 = pnand %p931_p8, %p925_p5 }
  0x15   :  { %935 = shalt.err (!%p932_p9)
}
  0x16   :  { %31 = dma.hbm_to_vmem [thread:$0]  %s1129_s2, 2048, %s26_s30, [#allocation3], %s984_s10, %s984_s10, %s985_s11  }
  0x17   :  { %s986_s17 = smov [#allocation6]   ;;  %s987_s19 = smov [#allocation7]  }
  0x18   :  { %s51_s18 = sshll.u32 %s986_s17, 4  ;;  %s63_s20 = sshll.u32 %s987_s19, 4  ;;  %s52_s18 = int_to_ptr.vmem [resolvable:$true] %s51_s18  ;;  %s64_s20 = int_to_ptr.vmem [resolvable:$true] %s63_s20 }
  0x19   :  { %s944_s4 = scalar_lea.vmem %s52_s18, 2048  ;;  %p949_p11 = scmp.lt.s32.totalorder %s52_s18, %s52_s18 }
  0x1a   :  { %p945_p10 = scmp.ne.s32.totalorder %s52_s18, %s944_s4  ;;  %p950_p12 = scmp.lt.s32.totalorder %s944_s4, %s944_s4 }
  0x1c   :  { %p951_p13 = por %p950_p12, %p949_p11 }
  0x1e   :  { %p952_p0 = pnand %p951_p13, %p945_p10 }
  0x20   :  { %955 = shalt.err (!%p952_p0)
}
  0x21   :  { %57 = dma.hbm_to_vmem [thread:$0]  %s1132_s5, 2048, %s52_s18, [#allocation5], %s984_s10, %s984_s10, %s985_s11  }
  0x22   :  { %s964_s2 = scalar_lea.vmem %s64_s20, 2048  ;;  %p969_p2 = scmp.lt.s32.totalorder %s64_s20, %s64_s20 }
  0x23   :  { %p965_p1 = scmp.ne.s32.totalorder %s64_s20, %s964_s2  ;;  %p970_p3 = scmp.lt.s32.totalorder %s964_s2, %s964_s2 }
  0x25   :  { %p971_p4 = por %p970_p3, %p969_p2 }
  0x27   :  { %p972_p5 = pnand %p971_p4, %p965_p1 }
  0x29   :  { %975 = shalt.err (!%p972_p5)
}
  0x2a   :  { %69 = dma.hbm_to_vmem [thread:$0]  %s1133_s6, 2048, %s64_s20, [#allocation8], %s984_s10, %s984_s10, %s985_s11  }
  0x2b   :  { %976 = dma.done.wait [#allocation3], 2048  }
  0x2c   :  { %977 = vsyncadd [#allocation3], 4294965248 }
  0x2d   :  { %978 = dma.done.wait [#allocation5], 4096  }
  0x2e   :  { %979 = vsyncadd [#allocation5], 4294963200 }
  0x2f   :  { %980 = dma.done.wait [#allocation8], 2048  }
  0x30   :  { %981 = vsyncadd [#allocation8], 4294965248  ;;  %v110_v0 = vld [vmem:[#allocation2 + $0x78] sm:$0xff]  ;;  %v109_v1 = vld [vmem:[#allocation2 + $0x70] sm:$0xff]  ;;  %v216_v30 = vlaneseq }
  0x31   :  { %729 = vmatprep.subr.mxu0 %v110_v0  ;;  %v108_v2 = vld [vmem:[#allocation2 + $0x68] sm:$0xff]  ;;  %v107_v3 = vld [vmem:[#allocation2 + $0x60] sm:$0xff]  ;;  %v106_v5 = vld [vmem:[#allocation2 + $0x58] sm:$0xff] }
  0x32   :  { %730 = vmatpush3.msra.mxu0 %v110_v0  ;;  %v91_v4 = vld [vmem:[%s1127_s0] sm:$0xff]  ;;  %v105_v6 = vld [vmem:[#allocation2 + $0x50] sm:$0xff]  ;;  %v104_v7 = vld [vmem:[#allocation2 + $0x48] sm:$0xff]  ;;  %v217_v31 = vand.u32 127, %v216_v30 }
  0x33   :  { %731 = vmatprep.subr.mxu0 %v109_v1  ;;  %761 = vmatprep.mubr.f32.mxu0 %v91_v4  ;;  %v103_v8 = vld [vmem:[#allocation2 + $0x40] sm:$0xff]  ;;  %v102_v9 = vld [vmem:[#allocation2 + $0x38] sm:$0xff]  ;;  %v101_v10 = vld [vmem:[#allocation2 + $0x30] sm:$0xff] }
  0x34   :  { %732 = vmatpush3.msra.mxu0 %v109_v1  ;;  %v100_v11 = vld [vmem:[#allocation2 + $0x28] sm:$0xff]  ;;  %v99_v12 = vld [vmem:[#allocation2 + $0x20] sm:$0xff]  ;;  %v98_v13 = vld [vmem:[#allocation2 + $0x18] sm:$0xff]  ;;  %vm218_vm0 = vcmp.lt.s32.totalorder %v217_v31, 32 }
  0x35   :  { %733 = vmatprep.subr.mxu0 %v108_v2  ;;  %v97_v14 = vld [vmem:[#allocation2 + $0x10] sm:$0xff]  ;;  %v96_v15 = vld [vmem:[#allocation2 + $0x8] sm:$0xff]  ;;  %v95_v16 = vld [vmem:[#allocation2] sm:$0xff] }
  0x36   :  { %734 = vmatpush3.msra.mxu0 %v108_v2  ;;  %v92_v17 = vld [vmem:[%s1127_s0 + $0x8] sm:$0xff]  ;;  %v93_v18 = vld [vmem:[%s1127_s0 + $0x10] sm:$0xff]  ;;  %v94_v19 = vld [vmem:[%s1127_s0 + $0x18] sm:$0xff] }
  0x37   :  { %735 = vmatprep.subr.mxu0 %v107_v3  ;;  %v643_v21 = vld [vmem:[%s1130_s3] ss:$0 sm:$0xff]  ;;  %v286_v29 = vld [vmem:[#allocation4 + $0x78] sm:$0xff]  ;;  %v285_v52 = vld [vmem:[#allocation4 + $0x70] sm:$0xff] }
  0x38   :  { %736 = vmatpush3.msra.mxu0 %v107_v3  ;;  %767 = vmatprep.subr.mxu1 %v286_v29  ;;  %v284_v53 = vld [vmem:[#allocation4 + $0x68] sm:$0xff]  ;;  %v283_v54 = vld [vmem:[#allocation4 + $0x60] sm:$0xff]  ;;  %v282_v55 = vld [vmem:[#allocation4 + $0x58] sm:$0xff] }
  0x39   :  { %737 = vmatprep.subr.mxu0 %v106_v5  ;;  %768 = vmatpush3.msra.mxu1 %v286_v29  ;;  %v281_v56 = vld [vmem:[#allocation4 + $0x50] sm:$0xff]  ;;  %v280_v57 = vld [vmem:[#allocation4 + $0x48] sm:$0xff]  ;;  %v279_v58 = vld [vmem:[#allocation4 + $0x40] sm:$0xff] }
  0x3a   :  { %738 = vmatpush3.msra.mxu0 %v106_v5  ;;  %769 = vmatprep.subr.mxu1 %v285_v52  ;;  %v278_v59 = vld [vmem:[#allocation4 + $0x38] sm:$0xff]  ;;  %v277_v60 = vld [vmem:[#allocation4 + $0x30] sm:$0xff]  ;;  %v276_v61 = vld [vmem:[#allocation4 + $0x28] sm:$0xff] }
  0x3b   :  { %739 = vmatprep.subr.mxu0 %v105_v6  ;;  %770 = vmatpush3.msra.mxu1 %v285_v52  ;;  %v275_v62 = vld [vmem:[#allocation4 + $0x20] sm:$0xff]  ;;  %v274_v63 = vld [vmem:[#allocation4 + $0x18] sm:$0xff]  ;;  %v273_v0 = vld [vmem:[#allocation4 + $0x10] sm:$0xff] }
  0x3c   :  { %740 = vmatpush3.msra.mxu0 %v105_v6  ;;  %771 = vmatprep.subr.mxu1 %v284_v53  ;;  %v272_v1 = vld [vmem:[#allocation4 + $0x8] sm:$0xff]  ;;  %v271_v2 = vld [vmem:[#allocation4] sm:$0xff]  ;;  %v395_v3 = vld [vmem:[#allocation6 + $0x78] sm:$0xff] }
  0x3d   :  { %741 = vmatprep.subr.mxu0 %v104_v7  ;;  %772 = vmatpush3.msra.mxu1 %v284_v53  ;;  %v394_v4 = vld [vmem:[#allocation6 + $0x70] sm:$0xff]  ;;  %v393_v5 = vld [vmem:[#allocation6 + $0x68] sm:$0xff]  ;;  %v392_v6 = vld [vmem:[#allocation6 + $0x60] sm:$0xff] }
  0x3e   :  { %742 = vmatpush3.msra.mxu0 %v104_v7  ;;  %773 = vmatprep.subr.mxu1 %v283_v54  ;;  %v391_v7 = vld [vmem:[#allocation6 + $0x58] sm:$0xff]  ;;  %v645_v30 = vld [vmem:[%s1130_s3 + $0x2] ss:$0 sm:$0xff]  ;;  %v381_v52 = vld [vmem:[#allocation6 + $0x8] sm:$0xff] }
  0x3f   :  { %743 = vmatprep.subr.mxu0 %v103_v8  ;;  %774 = vmatpush3.msra.mxu1 %v283_v54  ;;  %v380_v53 = vld [vmem:[#allocation6] sm:$0xff]  ;;  %v503_v54 = vld [vmem:[#allocation7 + $0x70] sm:$0xff] }
  0x40   :  { %744 = vmatpush3.msra.mxu0 %v103_v8  ;;  %775 = vmatprep.subr.mxu1 %v282_v55  ;;  %v390_v8 = vld [vmem:[#allocation6 + $0x50] sm:$0xff] }
  0x41   :  { %745 = vmatprep.subr.mxu0 %v102_v9  ;;  %776 = vmatpush3.msra.mxu1 %v282_v55  ;;  %v502_v55 = vld [vmem:[#allocation7 + $0x68] sm:$0xff] }
  0x42   :  { %746 = vmatpush3.msra.mxu0 %v102_v9  ;;  %777 = vmatprep.subr.mxu1 %v281_v56  ;;  %v389_v9 = vld [vmem:[#allocation6 + $0x48] sm:$0xff] }
  0x43   :  { %747 = vmatprep.subr.mxu0 %v101_v10  ;;  %778 = vmatpush3.msra.mxu1 %v281_v56  ;;  %v501_v56 = vld [vmem:[#allocation7 + $0x60] sm:$0xff] }
  0x44   :  { %748 = vmatpush3.msra.mxu0 %v101_v10  ;;  %779 = vmatprep.subr.mxu1 %v280_v57  ;;  %v388_v10 = vld [vmem:[#allocation6 + $0x40] sm:$0xff] }
  0x45   :  { %749 = vmatprep.subr.mxu0 %v100_v11  ;;  %780 = vmatpush3.msra.mxu1 %v280_v57  ;;  %v500_v57 = vld [vmem:[#allocation7 + $0x58] sm:$0xff] }
  0x46   :  { %750 = vmatpush3.msra.mxu0 %v100_v11  ;;  %781 = vmatprep.subr.mxu1 %v279_v58  ;;  %v387_v11 = vld [vmem:[#allocation6 + $0x38] sm:$0xff] }
  0x47   :  { %751 = vmatprep.subr.mxu0 %v99_v12  ;;  %782 = vmatpush3.msra.mxu1 %v279_v58  ;;  %v499_v58 = vld [vmem:[#allocation7 + $0x50] sm:$0xff] }
  0x48   :  { %752 = vmatpush3.msra.mxu0 %v99_v12  ;;  %783 = vmatprep.subr.mxu1 %v278_v59  ;;  %v386_v12 = vld [vmem:[#allocation6 + $0x30] sm:$0xff] }
  0x49   :  { %753 = vmatprep.subr.mxu0 %v98_v13  ;;  %784 = vmatpush3.msra.mxu1 %v278_v59  ;;  %v498_v59 = vld [vmem:[#allocation7 + $0x48] sm:$0xff] }
  0x4a   :  { %754 = vmatpush3.msra.mxu0 %v98_v13  ;;  %785 = vmatprep.subr.mxu1 %v277_v60  ;;  %v385_v13 = vld [vmem:[#allocation6 + $0x28] sm:$0xff] }
  0x4b   :  { %755 = vmatprep.subr.mxu0 %v97_v14  ;;  %786 = vmatpush3.msra.mxu1 %v277_v60  ;;  %v497_v60 = vld [vmem:[#allocation7 + $0x40] sm:$0xff] }
  0x4c   :  { %756 = vmatpush3.msra.mxu0 %v97_v14  ;;  %787 = vmatprep.subr.mxu1 %v276_v61  ;;  %v384_v14 = vld [vmem:[#allocation6 + $0x20] sm:$0xff] }
  0x4d   :  { %757 = vmatprep.subr.mxu0 %v96_v15  ;;  %788 = vmatpush3.msra.mxu1 %v276_v61  ;;  %v496_v61 = vld [vmem:[#allocation7 + $0x38] sm:$0xff] }
  0x4e   :  { %758 = vmatpush3.msra.mxu0 %v96_v15  ;;  %789 = vmatprep.subr.mxu1 %v275_v62 }
  0x4f   :  { %759 = vmatprep.subr.mxu0 %v95_v16  ;;  %790 = vmatpush3.msra.mxu1 %v275_v62  ;;  %v495_v62 = vld [vmem:[#allocation7 + $0x30] sm:$0xff] }
  0x50   :  { %760 = vmatpush3.msra.mxu0 %v95_v16  ;;  %791 = vmatprep.subr.mxu1 %v274_v63 }
  0x51   :  { %762 = vmatmul.mubr.f32.vlgmr.msra.gmra.mxu0 %v92_v17  ;;  %792 = vmatpush3.msra.mxu1 %v274_v63  ;;  %v494_v63 = vld [vmem:[#allocation7 + $0x28] sm:$0xff] }
  0x52   :  { %764 = vmatprep.mubr.f32.mxu0 %v93_v18  ;;  %793 = vmatprep.subr.mxu1 %v273_v0 }
  0x53   :  { %794 = vmatpush3.msra.mxu1 %v273_v0  ;;  %805 = vmatprep.subr.mxu0 %v395_v3  ;;  %v493_v0 = vld [vmem:[#allocation7 + $0x20] sm:$0xff] }
  0x54   :  { %795 = vmatprep.subr.mxu1 %v272_v1  ;;  %806 = vmatpush3.msra.mxu0 %v395_v3 }
  0x55   :  { %765 = vmatmul.mubr.f32.gmra.mxu0 %v94_v19  ;;  %796 = vmatpush3.msra.mxu1 %v272_v1  ;;  %v646_v1 = vld [vmem:[%s1130_s3 + $0x3] ss:$0 sm:$0xff] }
  0x56   :  { %797 = vmatprep.subr.mxu1 %v271_v2  ;;  %807 = vmatprep.subr.mxu0 %v394_v4 }
  0x57   :  { %798 = vmatpush3.msra.mxu1 %v271_v2  ;;  %808 = vmatpush3.msra.mxu0 %v394_v4 }
  0x58   :  { %809 = vmatprep.subr.mxu0 %v393_v5 }
  0x59   :  { %810 = vmatpush3.msra.mxu0 %v393_v5 }
  0x5a   :  { %811 = vmatprep.subr.mxu0 %v392_v6 }
  0x5b   :  { %812 = vmatpush3.msra.mxu0 %v392_v6 }
  0x5c   :  { %813 = vmatprep.subr.mxu0 %v391_v7 }
  0x5d   :  { %814 = vmatpush3.msra.mxu0 %v391_v7 }
  0x5e   :  { %815 = vmatprep.subr.mxu0 %v390_v8 }
  0x5f   :  { %816 = vmatpush3.msra.mxu0 %v390_v8 }
  0x60   :  { %817 = vmatprep.subr.mxu0 %v389_v9 }
  0x61   :  { %818 = vmatpush3.msra.mxu0 %v389_v9 }
  0x62   :  { %819 = vmatprep.subr.mxu0 %v388_v10 }
  0x63   :  { %820 = vmatpush3.msra.mxu0 %v388_v10 }
  0x64   :  { %821 = vmatprep.subr.mxu0 %v387_v11 }
  0x65   :  { %822 = vmatpush3.msra.mxu0 %v387_v11 }
  0x66   :  { %823 = vmatprep.subr.mxu0 %v386_v12 }
  0x67   :  { %824 = vmatpush3.msra.mxu0 %v386_v12 }
  0x68   :  { %825 = vmatprep.subr.mxu0 %v385_v13 }
  0x69   :  { %826 = vmatpush3.msra.mxu0 %v385_v13 }
  0x6a   :  { %827 = vmatprep.subr.mxu0 %v384_v14 }
  0x6b   :  { %828 = vmatpush3.msra.mxu0 %v384_v14  ;;  %v492_v14 = vld [vmem:[#allocation7 + $0x18] sm:$0xff] }
 0x111   :  { %v763_v20 = vpop.f32.mrf.mxu0 }
 0x112   :  { %v187_v26 = vadd.f32 %v763_v20, %v643_v21 }
 0x113   :  { %v181_v22 = vpop.f32.mrf.mxu0 }
 0x114   :  { %v182_v23 = vadd.f32 %v643_v21, %v181_v22 }
 0x115   :  { %v766_v24 = vpop.f32.mrf.mxu0 }
 0x116   :  { %200 = vadd.xlane.f32.xlu0 %v182_v23  ;;  %v197_v28 = vadd.f32 %v766_v24, %v643_v21 }
 0x117   :  { %v191_v25 = vpop.f32.mrf.mxu0 }
 0x118   :  { %v192_v27 = vadd.f32 %v643_v21, %v191_v25 }
 0x11a   :  { %204 = vadd.xlane.f32.xlu1 %v192_v27  ;;  %202 = vadd.xlane.f32.xlu0 %v187_v26 }
 0x11e   :  { %206 = vadd.xlane.f32.xlu1 %v197_v28 }
 0x19f   :  { %v201_v32 = vpop.xlane.xlu0 %200 }
 0x1a0   :  { %v208_v33 = vmul.f32 0.03125, %v201_v32 }
 0x1a2   :  { %v212_v34 = vsub.f32 %v182_v23, %v208_v33 }
 0x1a3   :  { %v205_v35 = vpop.xlane.xlu1 %204  ;;  %v203_v36 = vpop.xlane.xlu0 %202 }
 0x1a4   :  { %v210_v37 = vmul.f32 0.03125, %v205_v35  ;;  %v209_v38 = vmul.f32 0.03125, %v203_v36  ;;  %v1074_v39 = vsel %vm218_vm0, %v212_v34, 0.0 }
 0x1a5   :  { %v223_v40 = vmul.f32 %v1074_v39, %v1074_v39 }
 0x1a6   :  { %v214_v41 = vsub.f32 %v192_v27, %v210_v37  ;;  %v213_v42 = vsub.f32 %v187_v26, %v209_v38 }
 0x1a7   :  { %v207_v43 = vpop.xlane.xlu1 %206  ;;  %227 = vadd.xlane.f32.xlu0 %v223_v40 }
 0x1a8   :  { %v211_v44 = vmul.f32 0.03125, %v207_v43  ;;  %v1079_v45 = vsel %vm218_vm0, %v214_v41, 0.0  ;;  %v1082_v46 = vsel %vm218_vm0, %v213_v42, 0.0 }
 0x1a9   :  { %v225_v47 = vmul.f32 %v1079_v45, %v1079_v45  ;;  %v224_v48 = vmul.f32 %v1082_v46, %v1082_v46 }
 0x1aa   :  { %v215_v49 = vsub.f32 %v197_v28, %v211_v44  ;;  %v644_v28 = vld [vmem:[%s1130_s3 + $0x1] ss:$0 sm:$0xff] }
 0x1ab   :  { %231 = vadd.xlane.f32.xlu0 %v225_v47  ;;  %229 = vadd.xlane.f32.xlu1 %v224_v48 }
 0x1ac   :  { %v1089_v50 = vsel %vm218_vm0, %v215_v49, 0.0 }
 0x1ad   :  { %v226_v51 = vmul.f32 %v1089_v50, %v1089_v50 }
 0x1af   :  { %233 = vadd.xlane.f32.xlu1 %v226_v51 }
 0x230   :  { %v228_v15 = vpop.xlane.xlu0 %227 }
 0x231   :  { %v235_v16 = vmul.f32 0.03125, %v228_v15  ;;  %v491_v15 = vld [vmem:[#allocation7 + $0x10] sm:$0xff] }
 0x233   :  { %v239_v17 = vadd.f32 1e-05, %v235_v16  ;;  %v490_v16 = vld [vmem:[#allocation7 + $0x8] sm:$0xff] }
 0x234   :  { %v230_v18 = vpop.xlane.xlu1 %229  ;;  %v232_v19 = vpop.xlane.xlu0 %231 }
 0x235   :  { %888 = vrsqrt.f32 %v239_v17  ;;  %v236_v20 = vmul.f32 0.03125, %v230_v18  ;;  %v237_v21 = vmul.f32 0.03125, %v232_v19  ;;  %v489_v17 = vld [vmem:[#allocation7] sm:$0xff] }
 0x236   :  { %v647_v18 = vld [vmem:[%s1130_s3 + $0x4] ss:$0 sm:$0xff] }
 0x237   :  { %v240_v22 = vadd.f32 1e-05, %v236_v20  ;;  %v241_v23 = vadd.f32 1e-05, %v237_v21 }
 0x238   :  { %v234_v24 = vpop.xlane.xlu1 %233 }
 0x239   :  { %890 = vrsqrt.f32 %v240_v22  ;;  %v238_v25 = vmul.f32 0.03125, %v234_v24 }
 0x23a   :  { %892 = vrsqrt.f32 %v241_v23 }
 0x23b   :  { %v242_v26 = vadd.f32 1e-05, %v238_v25 }
 0x23d   :  { %894 = vrsqrt.f32 %v242_v26 }
 0x242   :  { %v889_v27 = vpop.eup %888 }
 0x243   :  { %v247_v29 = vmul.f32 %v889_v27, %v1074_v39 }
 0x245   :  { %v255_v31 = vmul.f32 %v644_v28, %v247_v29 }
 0x246   :  { %v891_v32 = vpop.eup %890 }
 0x247   :  { %v893_v33 = vpop.eup %892  ;;  %v263_v34 = vadd.f32 %v645_v30, %v255_v31  ;;  %v248_v35 = vmul.f32 %v891_v32, %v1082_v46  ;;  %v383_v46 = vld [vmem:[#allocation6 + $0x18] sm:$0xff]  ;;  %v597_v31 = vld [vmem:[%s1128_s1] sm:$0xff]  ;;  %v988_v32 = vmov 0  }
 0x248   :  { %v249_v36 = vmul.f32 %v893_v33, %v1079_v45  ;;  %829 = vmatprep.subr.mxu0 %v383_v46  ;;  %v382_v45 = vld [vmem:[#allocation6 + $0x10] sm:$0xff]  ;;  %vm598_vm1 = vnez %v597_v31 }
 0x249   :  { %v267_v37 = vmax.f32 %v263_v34, 0.0  ;;  %v256_v38 = vmul.f32 %v644_v28, %v248_v35  ;;  %830 = vmatpush3.msra.mxu0 %v383_v46  ;;  %v599_v33 = vsel %vm598_vm1, 16843009, %v988_v32 }
 0x24a   :  { %v895_v40 = vpop.eup %894  ;;  %v257_v41 = vmul.f32 %v644_v28, %v249_v36  ;;  %831 = vmatprep.subr.mxu0 %v382_v45  ;;  %v601_v34 = vunpack.c.1.s8 %v599_v33  ;;  %v600_v35 = vunpack.c.0.s8 %v599_v33 }
 0x24b   :  { %799 = vmatprep.mubr.f32.mxu1 %v267_v37  ;;  %v264_v42 = vadd.f32 %v645_v30, %v256_v38  ;;  %v250_v39 = vmul.f32 %v895_v40, %v1089_v50  ;;  %832 = vmatpush3.msra.mxu0 %v382_v45  ;;  %v504_v50 = vld [vmem:[#allocation7 + $0x78] sm:$0xff]  ;;  %v603_v37 = vunpack.c.3.s8 %v599_v33  ;;  %v602_v40 = vunpack.c.2.s8 %v599_v33  ;;  %v648_v45 = vld [vmem:[%s1134_s7] ss:$0 sm:$0xff] }
 0x24c   :  { %v265_v43 = vadd.f32 %v645_v30, %v257_v41  ;;  %833 = vmatprep.subr.mxu0 %v381_v52  ;;  %843 = vmatprep.subr.mxu1 %v504_v50  ;;  %v606_v36 = vpack.c.b16 %v601_v34, %v601_v34  ;;  %v604_v38 = vpack.c.b16 %v600_v35, %v600_v35 }
 0x24d   :  { %v268_v44 = vmax.f32 %v264_v42, 0.0  ;;  %v258_v47 = vmul.f32 %v644_v28, %v250_v39  ;;  %834 = vmatpush3.msra.mxu0 %v381_v52  ;;  %v610_v42 = vpack.c.b16 %v603_v37, %v603_v37 }
 0x24e   :  { %v269_v48 = vmax.f32 %v265_v43, 0.0  ;;  %835 = vmatprep.subr.mxu0 %v380_v53  ;;  %v607_v41 = vpack.c.b8 %v606_v36, %v606_v36  ;;  %v605_v39 = vpack.c.b8 %v604_v38, %v604_v38  ;;  %v608_v43 = vpack.c.b16 %v602_v40, %v602_v40 }
 0x24f   :  { %800 = vmatmul.mubr.f32.vlgmr.msra.gmra.mxu1 %v268_v44  ;;  %v266_v49 = vadd.f32 %v645_v30, %v258_v47  ;;  %836 = vmatpush3.msra.mxu0 %v380_v53  ;;  %v611_v44 = vpack.c.b8 %v610_v42, %v610_v42 }
 0x250   :  { %802 = vmatprep.mubr.f32.mxu1 %v269_v48  ;;  %844 = vmatpush3.msra.mxu1 %v504_v50  ;;  %vm613_vm2 = vnez %v607_v41  ;;  %vm612_vm3 = vnez %v605_v39  ;;  %v609_v47 = vpack.c.b8 %v608_v43, %v608_v43 }
 0x251   :  { %v270_v51 = vmax.f32 %v266_v49, 0.0  ;;  %845 = vmatprep.subr.mxu1 %v503_v54  ;;  %v617_v48 = vsel %vm613_vm2, 16843009, %v988_v32  ;;  %vm615_vm4 = vnez %v611_v44  ;;  %v616_v49 = vsel %vm612_vm3, 16843009, %v988_v32 }
 0x252   :  { %846 = vmatpush3.msra.mxu1 %v503_v54  ;;  %vm614_vm5 = vnez %v609_v47  ;;  %v619_v46 = vsel %vm615_vm4, 16843009, %v988_v32  ;;  %v620_v52 = vunpack.c.0.s8 %v616_v49 }
 0x253   :  { %803 = vmatmul.mubr.f32.gmra.mxu1 %v270_v51  ;;  %847 = vmatprep.subr.mxu1 %v502_v55  ;;  %v621_v51 = vunpack.c.0.s8 %v617_v48  ;;  %v618_v53 = vsel %vm614_vm5, 16843009, %v988_v32  ;;  %v623_v54 = vunpack.c.0.s8 %v619_v46 }
 0x254   :  { %848 = vmatpush3.msra.mxu1 %v502_v55  ;;  %vm624_vm7 = vcmp.ne.s32.totalorder %v620_v52, 0 }
 0x255   :  { %849 = vmatprep.subr.mxu1 %v501_v56  ;;  %vm625_vm6 = vcmp.ne.s32.totalorder %v621_v51, 0  ;;  %vm627_vm8 = vcmp.ne.s32.totalorder %v623_v54, 0 }
 0x256   :  { %850 = vmatpush3.msra.mxu1 %v501_v56 }
 0x257   :  { %851 = vmatprep.subr.mxu1 %v500_v57 }
 0x258   :  { %852 = vmatpush3.msra.mxu1 %v500_v57  ;;  %v622_v57 = vunpack.c.0.s8 %v618_v53 }
 0x259   :  { %853 = vmatprep.subr.mxu1 %v499_v58 }
 0x25a   :  { %854 = vmatpush3.msra.mxu1 %v499_v58  ;;  %vm626_vm9 = vcmp.ne.s32.totalorder %v622_v57, 0 }
 0x25b   :  { %855 = vmatprep.subr.mxu1 %v498_v59 }
 0x25c   :  { %856 = vmatpush3.msra.mxu1 %v498_v59 }
 0x25d   :  { %857 = vmatprep.subr.mxu1 %v497_v60 }
 0x25e   :  { %858 = vmatpush3.msra.mxu1 %v497_v60 }
 0x25f   :  { %859 = vmatprep.subr.mxu1 %v496_v61 }
 0x260   :  { %860 = vmatpush3.msra.mxu1 %v496_v61 }
 0x261   :  { %861 = vmatprep.subr.mxu1 %v495_v62 }
 0x262   :  { %862 = vmatpush3.msra.mxu1 %v495_v62 }
 0x263   :  { %863 = vmatprep.subr.mxu1 %v494_v63 }
 0x264   :  { %864 = vmatpush3.msra.mxu1 %v494_v63 }
 0x265   :  { %865 = vmatprep.subr.mxu1 %v493_v0 }
 0x266   :  { %866 = vmatpush3.msra.mxu1 %v493_v0 }
 0x267   :  { %867 = vmatprep.subr.mxu1 %v492_v14 }
 0x268   :  { %868 = vmatpush3.msra.mxu1 %v492_v14 }
 0x269   :  { %869 = vmatprep.subr.mxu1 %v491_v15 }
 0x26a   :  { %870 = vmatpush3.msra.mxu1 %v491_v15 }
 0x26b   :  { %871 = vmatprep.subr.mxu1 %v490_v16 }
 0x26c   :  { %872 = vmatpush3.msra.mxu1 %v490_v16 }
 0x26d   :  { %873 = vmatprep.subr.mxu1 %v489_v17 }
 0x26e   :  { %874 = vmatpush3.msra.mxu1 %v489_v17 }
 0x30f   :  { %v801_v2 = vpop.f32.mrf.mxu1 }
 0x310   :  { %v363_v3 = vadd.f32 %v801_v2, %v646_v1 }
 0x311   :  { %v357_v4 = vpop.f32.mrf.mxu1 }
 0x312   :  { %v358_v5 = vadd.f32 %v646_v1, %v357_v4  ;;  %v377_v8 = vmax.f32 %v363_v3, 0.0 }
 0x313   :  { %v804_v6 = vpop.f32.mrf.mxu1 }
 0x314   :  { %v376_v7 = vmax.f32 %v358_v5, 0.0  ;;  %v373_v9 = vadd.f32 %v804_v6, %v646_v1 }
 0x315   :  { %v367_v10 = vpop.f32.mrf.mxu1 }
 0x316   :  { %v368_v11 = vadd.f32 %v646_v1, %v367_v10  ;;  %837 = vmatprep.mubr.f32.mxu0 %v376_v7  ;;  %v379_v13 = vmax.f32 %v373_v9, 0.0 }
 0x317   :  { %838 = vmatmul.mubr.f32.vlgmr.msra.gmra.mxu0 %v377_v8 }
 0x318   :  { %v378_v12 = vmax.f32 %v368_v11, 0.0 }
 0x31a   :  { %840 = vmatprep.mubr.f32.mxu0 %v378_v12 }
 0x31b   :  { %841 = vmatmul.mubr.f32.gmra.mxu0 %v379_v13 }
 0x3d7   :  { %v839_v19 = vpop.f32.mrf.mxu0 }
 0x3d8   :  { %v472_v20 = vadd.f32 %v839_v19, %v647_v18 }
 0x3d9   :  { %v466_v21 = vpop.f32.mrf.mxu0 }
 0x3da   :  { %v467_v22 = vadd.f32 %v647_v18, %v466_v21  ;;  %v486_v25 = vmax.f32 %v472_v20, 0.0 }
 0x3db   :  { %v842_v23 = vpop.f32.mrf.mxu0 }
 0x3dc   :  { %v485_v24 = vmax.f32 %v467_v22, 0.0  ;;  %v482_v26 = vadd.f32 %v842_v23, %v647_v18 }
 0x3dd   :  { %v476_v27 = vpop.f32.mrf.mxu0 }
 0x3de   :  { %v477_v28 = vadd.f32 %v647_v18, %v476_v27  ;;  %875 = vmatprep.mubr.f32.mxu1 %v485_v24  ;;  %v488_v30 = vmax.f32 %v482_v26, 0.0 }
 0x3df   :  { %876 = vmatmul.mubr.f32.vlgmr.msra.gmra.mxu1 %v486_v25 }
 0x3e0   :  { %v487_v29 = vmax.f32 %v477_v28, 0.0 }
 0x3e2   :  { %878 = vmatprep.mubr.f32.mxu1 %v487_v29 }
 0x3e3   :  { %879 = vmatmul.mubr.f32.gmra.mxu1 %v488_v30 }
 0x49f   :  { %v877_v50 = vpop.f32.mrf.mxu1 }
 0x4a0   :  { %v584_v55 = vadd.f32 %v877_v50, %v648_v45 }
 0x4a1   :  { %v578_v56 = vpop.f32.mrf.mxu1 }
 0x4a2   :  { %v629_v58 = vsel %vm625_vm6, %v584_v55, -3.4028235e+38  ;;  %v579_v59 = vadd.f32 %v648_v45, %v578_v56 }
 0x4a3   :  { %633 = vst [vmem:[%s1135_s8 + $0x8] sm:$0xff] %v629_v58  ;;  %v880_v60 = vpop.f32.mrf.mxu1 }
 0x4a4   :  { %v628_v61 = vsel %vm624_vm7, %v579_v59, -3.4028235e+38  ;;  %v594_v62 = vadd.f32 %v880_v60, %v648_v45 }
 0x4a5   :  { %632 = vst [vmem:[%s1135_s8] sm:$0xff] %v628_v61  ;;  %v588_v63 = vpop.f32.mrf.mxu1 }
 0x4a6   :  { %v631_v0 = vsel %vm627_vm8, %v594_v62, -3.4028235e+38  ;;  %v589_v1 = vadd.f32 %v648_v45, %v588_v63 }
 0x4a7   :  { %635 = vst [vmem:[%s1135_s8 + $0x18] sm:$0xff] %v631_v0 }
 0x4a8   :  { %v630_v2 = vsel %vm626_vm9, %v589_v1, -3.4028235e+38 }
 0x4a9   :  { %634 = vst [vmem:[%s1135_s8 + $0x10] sm:$0xff] %v630_v2 }
 0x4aa   :  { %640 = vsyncpa [#allocation3], 1 }
 0x4ab   :  { %641 = vsyncpa [#allocation5], 1 }
 0x4ac   :  { %642 = vsyncpa [#allocation8], 1 }

</bundles_post_ra>
